<compile_context>
chip_gen: v6e
topology: v6e:2x2x1
jax: 0.10.0
libtpu: 0.0.40
codegen_flags: <defaults>
</compile_context>

<pallas_src>
import functools
import math

import jax
import jax.numpy as jnp
from jax.experimental import pallas as pl
from jax.experimental.pallas import tpu as pltpu


def _self_attention_kernel(x_ref, wqkv_ref, bqkv_ref, o_ref, *, matmul_dtype):
    # x_ref:    (Bb, N, F)            activations (possibly bf16)
    # wqkv_ref: (F, F_out + 2F)       fused [V | Q | K] weight, pre-transposed
    # bqkv_ref: (1, F_out + 2F)       fused bias (f32)
    # o_ref:    (Bb, N, F_out)        lane-dense output block
    bb, n, f = x_ref.shape
    f_out = o_ref.shape[-1]
    scale = 1.0 / math.sqrt(float(f))

    # Fused projection: one wide 2-D MXU matmul with f32 accumulation.
    x2 = x_ref[...].reshape(bb * n, f)
    qkv = jnp.dot(x2, wqkv_ref[...], preferred_element_type=jnp.float32)
    qkv = qkv + bqkv_ref[...]                       # bias added once, in f32

    v = qkv[:, :f_out].reshape(bb, n, f_out)
    q = (qkv[:, f_out:f_out + f] * scale).reshape(bb, n, f)   # fold 1/sqrt(F) into q
    k = qkv[:, f_out + f:f_out + 2 * f].reshape(bb, n, f)

    # Attention scores (Bb, N, N): batched NT contraction, no explicit k.T.
    scores = jnp.einsum('bnf,bmf->bnm',
                        q.astype(matmul_dtype), k.astype(matmul_dtype),
                        preferred_element_type=jnp.float32)

    # Numerically stable softmax, kept entirely in f32 (VPU/EUP);
    # denominator reciprocal goes to the otherwise-idle EUP slot.
    m = jnp.max(scores, axis=-1, keepdims=True)
    e = jnp.exp(scores - m)
    denom = jnp.sum(e, axis=-1, keepdims=True)
    p = e * pl.reciprocal(denom, approx=True)

    out = jnp.einsum('bnm,bmf->bnf',
                     p.astype(matmul_dtype), v.astype(matmul_dtype),
                     preferred_element_type=jnp.float32)
    o_ref[...] = out.astype(o_ref.dtype)


def self_attention_pallas(x, wq, bq, wk, bk, wv, bv, *,
                          matmul_dtype=jnp.float32,
                          block_b=None,
                          lane_dense_output=True):
    """x: (B, C, S, F).  w*: (F, F) torch Linear layout (out, in); b*: (F,).
    Returns (B, C, S, F) in x.dtype.

    matmul_dtype: dtype of MXU operands (use jnp.bfloat16 on v6e/v7x for
    throughput); accumulation and softmax are always f32.
    """
    B, C, S, F = x.shape
    N = C * S
    out_dtype = x.dtype

    # Lane-dense output: pad only the V / output feature columns to a multiple
    # of 128 with zeros; padded output columns are exactly zero and sliced off.
    if lane_dense_output and F % 128 != 0:
        F_out = ((F + 127) // 128) * 128
    else:
        F_out = F

    # Fused [V | Q | K] weight, pre-transposed to (in, out) so the kernel does
    # x @ Wt + b == x @ W.T + b (torch Linear semantics).
    wv_t, bv_p = wv.T, bv
    if F_out != F:
        wv_t = jnp.pad(wv_t, ((0, 0), (0, F_out - F)))
        bv_p = jnp.pad(bv, (0, F_out - F))
    W = F_out + 2 * F
    wqkv = jnp.concatenate([wv_t, wq.T, wk.T], axis=1).astype(matmul_dtype)   # (F, W)
    bqkv = jnp.concatenate([bv_p, bq, bk]).astype(jnp.float32).reshape(1, W)  # (1, W)

    x_flat = x.reshape(B, N, F).astype(matmul_dtype)

    # Several batch elements per (sequential) grid step, capped so the per-step
    # working set fits comfortably in default scoped VMEM on all generations.
    if block_b is None:
        bytes_per_b = 4 * (N * N + N * W + 2 * N * F + N * F_out)
        budget = 24 * 1024 * 1024
        block_b = max(1, min(B, budget // max(bytes_per_b, 1)))
    block_b = max(1, min(block_b, B))
    while B % block_b != 0:
        block_b -= 1

    grid = (B // block_b,)
    kernel = functools.partial(_self_attention_kernel, matmul_dtype=matmul_dtype)

    out = pl.pallas_call(
        kernel,
        out_shape=jax.ShapeDtypeStruct((B, N, F_out), out_dtype),
        grid_spec=pltpu.PrefetchScalarGridSpec(
            num_scalar_prefetch=0,
            grid=grid,
            in_specs=[
                pl.BlockSpec((block_b, N, F), lambda b: (b, 0, 0)),   # x
                pl.BlockSpec((F, W), lambda b: (0, 0)),               # fused W
                pl.BlockSpec((1, W), lambda b: (0, 0)),               # fused bias
            ],
            out_specs=pl.BlockSpec((block_b, N, F_out), lambda b: (b, 0, 0)),
        ),
        compiler_params=pltpu.CompilerParams(
            dimension_semantics=("parallel",)),
    )(x_flat, wqkv, bqkv)

    if F_out != F:
        out = out[:, :, :F]
    return out.reshape(B, C, S, F)


def _reference(x, wq, bq, wk, bk, wv, bv):
    B, C, S, F = x.shape
    xf = x.reshape(B, C * S, F)
    q = xf @ wq.T + bq
    k = xf @ wk.T + bk
    v = xf @ wv.T + bv
    scores = (q @ jnp.swapaxes(k, -2, -1)) / math.sqrt(F)
    p = jax.nn.softmax(scores, axis=-1)
    return (p @ v).reshape(B, C, S, F)


if __name__ == "__main__":
    B, C, S, F = 2, 4, 8, 32   # N = C*S = 32

    key = jax.random.PRNGKey(0)
    kx, kq, kbq, kk, kbk, kv, kbv = jax.random.split(key, 7)

    x = jax.random.normal(kx, (B, C, S, F), dtype=jnp.float32)

    # PyTorch Linear default init: U(-1/sqrt(F), 1/sqrt(F)).
    bound = 1.0 / math.sqrt(F)
    wq = jax.random.uniform(kq, (F, F), jnp.float32, -bound, bound)
    bq = jax.random.uniform(kbq, (F,), jnp.float32, -bound, bound)
    wk = jax.random.uniform(kk, (F, F), jnp.float32, -bound, bound)
    bk = jax.random.uniform(kbk, (F,), jnp.float32, -bound, bound)
    wv = jax.random.uniform(kv, (F, F), jnp.float32, -bound, bound)
    bv = jax.random.uniform(kbv, (F,), jnp.float32, -bound, bound)

    ref = _reference(x, wq, bq, wk, bk, wv, bv)

    # f32 MXU operands (exact path; tolerance covers the approx reciprocal).
    out_f32 = self_attention_pallas(x, wq, bq, wk, bk, wv, bv,
                                    matmul_dtype=jnp.float32)
    out_f32 = jax.block_until_ready(out_f32)
    assert out_f32.shape == (B, C, S, F)
    assert jnp.allclose(out_f32, ref, atol=5e-3, rtol=5e-3), "f32 path mismatch"

    # bf16 MXU operands, f32 accumulation + f32 softmax (recommended on v6e/v7x).
    out_bf16 = self_attention_pallas(x, wq, bq, wk, bk, wv, bv,
                                     matmul_dtype=jnp.bfloat16)
    out_bf16 = jax.block_until_ready(out_bf16)
    assert out_bf16.shape == (B, C, S, F)
    assert jnp.allclose(out_bf16, ref, atol=2e-2, rtol=2e-2), "bf16 path mismatch"

    print("KERNEL_OK")
</pallas_src>

<mosaic_0001>
module attributes {stable_mosaic.version = 11 : i64} {
  func.func @_self_attention_kernel(%arg0: i32, %arg1: memref<2x32x32xf32, #tpu.memory_space<vmem>>, %arg2: memref<32x192xf32, #tpu.memory_space<vmem>>, %arg3: memref<1x192xf32, #tpu.memory_space<vmem>>, %arg4: memref<2x32x128xf32, #tpu.memory_space<vmem>>) attributes {dimension_semantics = [#tpu.dimension_semantics<parallel>], iteration_bounds = array<i64: 1>, scalar_prefetch = 0 : i64, scratch_operands = 0 : i64, tpu.core_type = #tpu.core_type<tc>, window_params = [{transform_indices = @transform_0, window_bounds = array<i64: 2, 32, 32>}, {pipeline_mode = #tpu.pipeline_mode<synchronous>, transform_indices = @transform_1, window_bounds = array<i64: 32, 192>}, {pipeline_mode = #tpu.pipeline_mode<synchronous>, transform_indices = @transform_2, window_bounds = array<i64: 1, 192>}, {transform_indices = @transform_3, window_bounds = array<i64: 2, 32, 128>}]} {
    %c0 = arith.constant 0 : index
    %c0_0 = arith.constant 0 : index
    %c0_1 = arith.constant 0 : index
    %0 = vector.load %arg1[%c0, %c0_0, %c0_1] : memref<2x32x32xf32, #tpu.memory_space<vmem>>, vector<2x32x32xf32>
    %1 = vector.shape_cast %0 : vector<2x32x32xf32> to vector<64x32xf32>
    %c0_2 = arith.constant 0 : index
    %c0_3 = arith.constant 0 : index
    %2 = vector.load %arg2[%c0_2, %c0_3] : memref<32x192xf32, #tpu.memory_space<vmem>>, vector<32x192xf32>
    %cst = arith.constant dense<0.000000e+00> : vector<64x192xf32>
    %3 = tpu.matmul %1, %2, %cst {dimension_numbers = #tpu.dot_dimension_numbers<[1], [0], [0], [1], [0, 0, 1, 1], [], []>} : vector<64x32xf32>, vector<32x192xf32>, vector<64x192xf32> -> vector<64x192xf32>
    %c0_4 = arith.constant 0 : index
    %c0_5 = arith.constant 0 : index
    %4 = vector.load %arg3[%c0_4, %c0_5] : memref<1x192xf32, #tpu.memory_space<vmem>>, vector<1x192xf32>
    %5 = vector.broadcast %4 : vector<1x192xf32> to vector<64x192xf32>
    %6 = arith.addf %3, %5 : vector<64x192xf32>
    %7 = vector.extract_strided_slice %6 {offsets = [0, 0], sizes = [64, 128], strides = [1, 1]} : vector<64x192xf32> to vector<64x128xf32>
    %8 = vector.shape_cast %7 : vector<64x128xf32> to vector<2x32x128xf32>
    %9 = vector.extract_strided_slice %6 {offsets = [0, 128], sizes = [64, 32], strides = [1, 1]} : vector<64x192xf32> to vector<64x32xf32>
    %cst_6 = arith.constant 0.176776692 : f32
    %10 = vector.broadcast %cst_6 : f32 to vector<64x32xf32>
    %11 = arith.mulf %9, %10 : vector<64x32xf32>
    %12 = vector.shape_cast %11 : vector<64x32xf32> to vector<2x32x32xf32>
    %13 = vector.extract_strided_slice %6 {offsets = [0, 160], sizes = [64, 32], strides = [1, 1]} : vector<64x192xf32> to vector<64x32xf32>
    %14 = vector.shape_cast %13 : vector<64x32xf32> to vector<2x32x32xf32>
    "tpu.trace_start"() <{level = 10 : i32, message = "bnf,bmf->bnm"}> : () -> ()
    %cst_7 = arith.constant dense<0.000000e+00> : vector<2x32x32xf32>
    %15 = tpu.matmul %12, %14, %cst_7 {dimension_numbers = #tpu.dot_dimension_numbers<[2], [2], [1], [1], [0, 0, 0, 1, 1, 1], [0], [0]>} : vector<2x32x32xf32>, vector<2x32x32xf32>, vector<2x32x32xf32> -> vector<2x32x32xf32>
    "tpu.trace_stop"() : () -> ()
    %cst_8 = arith.constant dense<0xFF800000> : vector<2x32xf32>
    %16 = vector.multi_reduction <maximumf>, %15, %cst_8 [2] : vector<2x32x32xf32> to vector<2x32xf32>
    %17 = vector.shape_cast %16 : vector<2x32xf32> to vector<2x32x1xf32>
    %18 = vector.broadcast %17 : vector<2x32x1xf32> to vector<2x32x32xf32>
    %19 = arith.subf %15, %18 : vector<2x32x32xf32>
    %20 = math.exp %19 : vector<2x32x32xf32>
    %cst_9 = arith.constant dense<0.000000e+00> : vector<2x32xf32>
    %21 = vector.multi_reduction <add>, %20, %cst_9 [2] : vector<2x32x32xf32> to vector<2x32xf32>
    %22 = vector.shape_cast %21 : vector<2x32xf32> to vector<2x32x1xf32>
    %23 = tpu.reciprocal %22 {approx = true} : vector<2x32x1xf32> -> vector<2x32x1xf32>
    %24 = vector.broadcast %23 : vector<2x32x1xf32> to vector<2x32x32xf32>
    %25 = arith.mulf %20, %24 : vector<2x32x32xf32>
    "tpu.trace_start"() <{level = 10 : i32, message = "bnm,bmf->bnf"}> : () -> ()
    %cst_10 = arith.constant dense<0.000000e+00> : vector<2x32x128xf32>
    %26 = tpu.matmul %25, %8, %cst_10 {dimension_numbers = #tpu.dot_dimension_numbers<[2], [1], [1], [2], [0, 0, 0, 1, 1, 2], [0], [0]>} : vector<2x32x32xf32>, vector<2x32x128xf32>, vector<2x32x128xf32> -> vector<2x32x128xf32>
    "tpu.trace_stop"() : () -> ()
    %c0_11 = arith.constant 0 : index
    %c0_12 = arith.constant 0 : index
    %c0_13 = arith.constant 0 : index
    %27 = vector.load %arg4[%c0_11, %c0_12, %c0_13] : memref<2x32x128xf32, #tpu.memory_space<vmem>>, vector<2x32x128xf32>
    tpu.vector_store %arg4[%c0_11, %c0_12, %c0_13], %26 {strides = array<i32>} : memref<2x32x128xf32, #tpu.memory_space<vmem>>, vector<2x32x128xf32>,
    return
  }
  func.func @transform_0(%arg0: i32) -> (i32, i32, i32) {
    %c0_i32 = arith.constant 0 : i32
    %c0_i32_0 = arith.constant 0 : i32
    %c0_i32_1 = arith.constant 0 : i32
    return %arg0, %c0_i32, %c0_i32_0 : i32, i32, i32
  }
  func.func @transform_1(%arg0: i32) -> (i32, i32) {
    %c0_i32 = arith.constant 0 : i32
    %c0_i32_0 = arith.constant 0 : i32
    %c0_i32_1 = arith.constant 0 : i32
    return %c0_i32, %c0_i32_0 : i32, i32
  }
  func.func @transform_2(%arg0: i32) -> (i32, i32) {
    %c0_i32 = arith.constant 0 : i32
    %c0_i32_0 = arith.constant 0 : i32
    %c0_i32_1 = arith.constant 0 : i32
    return %c0_i32, %c0_i32_0 : i32, i32
  }
  func.func @transform_3(%arg0: i32) -> (i32, i32, i32) {
    %c0_i32 = arith.constant 0 : i32
    %c0_i32_0 = arith.constant 0 : i32
    %c0_i32_1 = arith.constant 0 : i32
    return %arg0, %c0_i32, %c0_i32_0 : i32, i32, i32
  }
}

</mosaic_0001>

<bundles_post_ra>
// kernel: tpu_custom_call.1
= control target key start
LH: loop header
LB: loop body
LE: loop exit
PB: predicated region body
PF: predicated region fallthrough
CT: control target
= control target key end

     0   :  { %8 = vsyncpa [#allocation3], 0  ;;  %s1101_s0 = inlined_call_operand.hbm [shape: f32[2,32,32], index: 0, kind: input, shape index: {}]   ;;  %s1102_s1 = inlined_call_operand.hbm [shape: f32[32,192], index: 1, kind: input, shape index: {}]   ;;  %s1103_s2 = inlined_call_operand.vmem [shape: f32[1,192], index: 2, kind: input, shape index: {}]   ;;  %s1104_s3 = inlined_call_operand.hbm [shape: f32[2,32,128], index: 3, kind: output, shape index: {}]  }
   0x1   :  { %9 = vsyncpa [#allocation6], 0 }
   0x2   :  { %10 = vsyncpa [#allocation4], 0  ;;  %s986_s12 = smov [#allocation2]  }
   0x3   :  { %s16_s13 = sshll.u32 %s986_s12, 4  ;;  %s17_s13 = int_to_ptr.vmem [resolvable:$true] %s16_s13 }
   0x4   :  { %s928_s14 = scalar_lea.vmem %s17_s13, 1024  ;;  %p933_p1 = scmp.lt.s32.totalorder %s17_s13, %s17_s13 }
   0x5   :  { %p929_p0 = scmp.ne.s32.totalorder %s17_s13, %s928_s14  ;;  %p934_p2 = scmp.lt.s32.totalorder %s928_s14, %s928_s14 }
   0x7   :  { %p935_p3 = por %p934_p2, %p933_p1 }
   0x9   :  { %p936_p4 = pnand %p935_p3, %p929_p0 }
   0xb   :  { %939 = shalt.err (!%p936_p4)
}
   0xc   :  { %s987_s15 = smov 128   ;;  %s988_s16 = smov 8  }
   0xd   :  { %22 = dma.hbm_to_vmem [thread:$0]  %s1101_s0, 1024, %s17_s13, [#allocation3], %s987_s15, %s987_s15, %s988_s16  }
   0xe   :  { %s989_s19 = smov [#allocation5]  }
   0xf   :  { %s28_s20 = sshll.u32 %s989_s19, 4  ;;  %s29_s20 = int_to_ptr.vmem [resolvable:$true] %s28_s20 }
  0x10   :  { %s948_s21 = scalar_lea.vmem %s29_s20, 1024  ;;  %p953_p6 = scmp.lt.s32.totalorder %s29_s20, %s29_s20 }
  0x11   :  { %p949_p5 = scmp.ne.s32.totalorder %s29_s20, %s948_s21  ;;  %p954_p7 = scmp.lt.s32.totalorder %s948_s21, %s948_s21 }
  0x13   :  { %p955_p8 = por %p954_p7, %p953_p6 }
  0x15   :  { %p956_p9 = pnand %p955_p8, %p949_p5 }
  0x17   :  { %959 = shalt.err (!%p956_p9)
}
  0x18   :  { %s990_s22 = smov 256   ;;  %s991_s23 = smov 16  }
  0x19   :  { %34 = dma.hbm_to_vmem [thread:$0]  %s1102_s1, 1024, %s29_s20, [#allocation6], %s990_s22, %s990_s22, %s991_s23  }
  0x1a   :  { %980 = dma.done.wait [#allocation3], 1024  }
  0x1b   :  { %981 = vsyncadd [#allocation3], 4294966272 }
  0x1c   :  { %982 = dma.done.wait [#allocation6], 1024  }
  0x1d   :  { %983 = vsyncadd [#allocation6], 4294966272  ;;  %v992_v0 = vmov 0.0   ;;  %v58_v1 = vld [vmem:[#allocation5 + $0x38] sm:$0xff]  ;;  %v57_v2 = vld [vmem:[#allocation5 + $0x30] sm:$0xff]  ;;  %vm71_vm0 = vcmask 261120   ;;  %v61_v17 = vlaneseq }
  0x1e   :  { %160 = vmatprep.mubr.f32.mxu0 %v992_v0  ;;  %v56_v3 = vld [vmem:[#allocation5 + $0x28] sm:$0xff]  ;;  %120 = vmatprep.subr.mxu0 %v58_v1  ;;  %v55_v4 = vld [vmem:[#allocation5 + $0x20] sm:$0xff]  ;;  %v54_v5 = vld [vmem:[#allocation5 + $0x18] sm:$0xff]  ;;  %s993_s26 = smov 96  }
  0x1f   :  { %121 = vmatpush1.msra.mxu0 %v57_v2  ;;  %v53_v6 = vld [vmem:[#allocation5 + $0x10] sm:$0xff]  ;;  %v52_v7 = vld [vmem:[#allocation5 + $0x8] sm:$0xff]  ;;  %v51_v8 = vld [vmem:[#allocation5] sm:$0xff]  ;;  %v62_v18 = vshrl.u32 %v61_v17, 7 }
  0x20   :  { %122 = vmatprep.subr.mxu0 %v56_v3  ;;  %v43_v9 = vld [vmem:[#allocation2] sm:$0xff]  ;;  %v44_v10 = vld [vmem:[#allocation2 + $0x8] sm:$0xff]  ;;  %v45_v11 = vld [vmem:[#allocation2 + $0x10] sm:$0xff] }
  0x21   :  { %123 = vmatpush1.msra.mxu0 %v55_v4  ;;  %v46_v12 = vld [vmem:[#allocation2 + $0x18] sm:$0xff]  ;;  %v47_v13 = vld [vmem:[#allocation2 + $0x20] sm:$0xff]  ;;  %v48_v14 = vld [vmem:[#allocation2 + $0x28] sm:$0xff]  ;;  %v67_v19 = vsub.s32 1, %v62_v18  ;;  %v63_v28 = vsub.s32 0, %v62_v18 }
  0x22   :  { %124 = vmatprep.subr.mxu0 %v54_v5  ;;  %v49_v15 = vld [vmem:[#allocation2 + $0x30] sm:$0xff]  ;;  %v50_v16 = vld [vmem:[#allocation2 + $0x38] sm:$0xff]  ;;  %v59_v20 = vld [vmem:[%s1103_s2] sm:$0x3]  ;;  %s994_s2 = smov [#allocation7]  }
  0x23   :  { %125 = vmatpush1.msra.mxu0 %v53_v6  ;;  %v68_v21 = vrot.slane %v59_v20, %v67_v19  ;;  %v64_v32 = vrot.slane %v59_v20, %v63_v28  ;;  %s746_s27 = sshll.u32 %s994_s2, 4  ;;  %s747_s27 = int_to_ptr.vmem [resolvable:$true] %s746_s27 }
  0x24   :  { %126 = vmatprep.subr.mxu0 %v52_v7  ;;  %s960_s28 = scalar_lea.vmem %s747_s27, 1024  ;;  %p965_p11 = scmp.lt.s32.totalorder %s747_s27, %s747_s27 }
  0x25   :  { %127 = vmatpush1.msra.mxu0 %v51_v8  ;;  %p961_p10 = scmp.ne.s32.totalorder %s747_s27, %s960_s28  ;;  %p966_p12 = scmp.lt.s32.totalorder %s960_s28, %s960_s28 }
  0x26   :  { %759 = vmatmul.mubr.msk.f32.vlgmr.msra.gmra.mxu0 %vm71_vm0, %v43_v9 }
  0x27   :  { %166 = vmatprep.mubr.f32.mxu0 %v992_v0  ;;  %p967_p13 = por %p966_p12, %p965_p11 }
  0x29   :  { %p968_p0 = pnand %p967_p13, %p961_p10 }
  0x2a   :  { %760 = vmatmul.mubr.msk.f32.gmra.mxu0 %vm71_vm0, %v44_v10 }
  0x2b   :  { %172 = vmatprep.mubr.f32.mxu0 %v992_v0 }
  0x2e   :  { %761 = vmatmul.mubr.msk.f32.gmra.mxu0 %vm71_vm0, %v45_v11 }
  0x2f   :  { %178 = vmatprep.mubr.f32.mxu0 %v992_v0 }
  0x32   :  { %762 = vmatmul.mubr.msk.f32.gmra.mxu0 %vm71_vm0, %v46_v12 }
  0x33   :  { %184 = vmatprep.mubr.f32.mxu0 %v992_v0 }
  0x36   :  { %763 = vmatmul.mubr.msk.f32.gmra.mxu0 %vm71_vm0, %v47_v13 }
  0x37   :  { %190 = vmatprep.mubr.f32.mxu0 %v992_v0 }
  0x3a   :  { %764 = vmatmul.mubr.msk.f32.gmra.mxu0 %vm71_vm0, %v48_v14 }
  0x3b   :  { %196 = vmatprep.mubr.f32.mxu0 %v992_v0 }
  0x3e   :  { %765 = vmatmul.mubr.msk.f32.gmra.mxu0 %vm71_vm0, %v49_v15 }
  0x3f   :  { %202 = vmatprep.mubr.f32.mxu0 %v992_v0 }
  0x42   :  { %766 = vmatmul.mubr.msk.f32.gmra.mxu0 %vm71_vm0, %v50_v16 }
  0xe6   :  { %v162_v22 = vpop.f32.mrf.mxu0 }
  0xe7   :  { %v163_v42 = vadd.f32 %v162_v22, %v64_v32 }
  0xe8   :  { %v164_v23 = vpop.f32.mrf.mxu0 }
  0xe9   :  { %v165_v24 = vadd.f32 %v164_v23, %v68_v21 }
  0xea   :  { %v168_v25 = vpop.f32.mrf.mxu0 }
  0xeb   :  { %v209_v26 = vmul.f32 0.17677669, %v165_v24  ;;  %v169_v39 = vadd.f32 %v168_v25, %v64_v32 }
  0xec   :  { %v170_v27 = vpop.f32.mrf.mxu0 }
  0xed   :  { %v171_v29 = vadd.f32 %v170_v27, %v68_v21  ;;  %831 = vmatprep.mubr.msk.f32.mxu1 %vm71_vm0, %v209_v26 }
  0xee   :  { %v174_v30 = vpop.f32.mrf.mxu0 }
  0xef   :  { %223 = vrot.lane.b32.xlu1 %v171_v29, %s993_s26  ;;  %v175_v36 = vadd.f32 %v174_v30, %v64_v32  ;;  %v210_v61 = vmul.f32 0.17677669, %v171_v29 }
  0xf0   :  { %v176_v31 = vpop.f32.mrf.mxu0 }
  0xf1   :  { %v177_v43 = vadd.f32 %v176_v31, %v68_v21 }
  0xf2   :  { %v180_v33 = vpop.f32.mrf.mxu0 }
  0xf3   :  { %v181_v34 = vadd.f32 %v180_v33, %v64_v32  ;;  %221 = vrot.lane.b32.xlu1 %v165_v24, %s993_s26  ;;  %v211_v62 = vmul.f32 0.17677669, %v177_v43 }
  0xf4   :  { %v182_v35 = vpop.f32.mrf.mxu0 }
  0xf5   :  { %v183_v37 = vadd.f32 %v182_v35, %v68_v21  ;;  %851 = vmatprep.subr.mxu0 %v181_v34 }
  0xf6   :  { %v186_v38 = vpop.f32.mrf.mxu0  ;;  %852 = vmatpush3.msra.mxu0 %v181_v34 }
  0xf7   :  { %v1038_v40 = vadd.f32 %v186_v38, %v64_v32  ;;  %227 = vrot.lane.b32.xlu0 %v183_v37, %s993_s26  ;;  %853 = vmatprep.subr.mxu0 %v175_v36  ;;  %v212_v1 = vmul.f32 0.17677669, %v183_v37 }
  0xf8   :  { %v188_v41 = vpop.f32.mrf.mxu0  ;;  %854 = vmatpush3.msra.mxu0 %v175_v36 }
  0xf9   :  { %855 = vmatprep.subr.mxu0 %v169_v39  ;;  %v189_v54 = vadd.f32 %v188_v41, %v68_v21 }
  0xfa   :  { %v192_v44 = vpop.f32.mrf.mxu0  ;;  %856 = vmatpush3.msra.mxu0 %v169_v39 }
  0xfb   :  { %v193_v45 = vadd.f32 %v192_v44, %v64_v32  ;;  %225 = vrot.lane.b32.xlu0 %v177_v43, %s993_s26  ;;  %857 = vmatprep.subr.mxu0 %v163_v42  ;;  %v213_v2 = vmul.f32 0.17677669, %v189_v54 }
  0xfc   :  { %v194_v46 = vpop.f32.mrf.mxu0  ;;  %858 = vmatpush3.msra.mxu0 %v163_v42 }
  0xfd   :  { %v195_v56 = vadd.f32 %v194_v46, %v68_v21 }
  0xfe   :  { %v198_v47 = vpop.f32.mrf.mxu0 }
  0xff   :  { %v199_v48 = vadd.f32 %v198_v47, %v64_v32  ;;  %v214_v5 = vmul.f32 0.17677669, %v195_v56 }
 0x100   :  { %v200_v49 = vpop.f32.mrf.mxu0 }
 0x101   :  { %v201_v50 = vadd.f32 %v200_v49, %v68_v21 }
 0x102   :  { %v204_v51 = vpop.f32.mrf.mxu0 }
 0x103   :  { %v205_v52 = vadd.f32 %v204_v51, %v64_v32  ;;  %342 = vrot.lane.b32.xlu1 %v201_v50, %s993_s26  ;;  %v215_v6 = vmul.f32 0.17677669, %v201_v50 }
 0x104   :  { %v206_v53 = vpop.f32.mrf.mxu0 }
 0x105   :  { %v207_v55 = vadd.f32 %v206_v53, %v68_v21 }
 0x107   :  { %344 = vrot.lane.b32.xlu0 %v207_v55, %s993_s26  ;;  %338 = vrot.lane.b32.xlu1 %v189_v54, %s993_s26  ;;  %v216_v7 = vmul.f32 0.17677669, %v207_v55 }
 0x10b   :  { %340 = vrot.lane.b32.xlu0 %v195_v56, %s993_s26 }
 0x161   :  { %v224_v58 = vpop.permute.xlu1 %223 }
 0x165   :  { %v222_v60 = vpop.permute.xlu1 %221 }
 0x169   :  { %v228_v57 = vpop.permute.xlu0 %227 }
 0x16a   :  { %823 = vmatprep.subr.msk.mxu1 %vm71_vm0, %v228_v57 }
 0x16b   :  { %824 = vmatpush3.xpose.msk.msra.mxu1 %vm71_vm0, %v228_v57 }
 0x16d   :  { %v226_v59 = vpop.permute.xlu0 %225 }
 0x16e   :  { %825 = vmatprep.subr.msk.mxu1 %vm71_vm0, %v226_v59 }
 0x16f   :  { %826 = vmatpush3.xpose.msk.msra.mxu1 %vm71_vm0, %v226_v59 }
 0x170   :  { %827 = vmatprep.subr.msk.mxu1 %vm71_vm0, %v224_v58 }
 0x173   :  { %828 = vmatpush3.xpose.msk.msra.mxu1 %vm71_vm0, %v224_v58 }
 0x174   :  { %829 = vmatprep.subr.msk.mxu1 %vm71_vm0, %v222_v60 }
 0x175   :  { %v343_v0 = vpop.permute.xlu1 %342 }
 0x177   :  { %830 = vmatpush3.xpose.msk.msra.mxu1 %vm71_vm0, %v222_v60 }
 0x179   :  { %v345_v63 = vpop.permute.xlu0 %344  ;;  %v339_v4 = vpop.permute.xlu1 %338 }
 0x17a   :  { %832 = vmatmul.mubr.msk.f32.vlgmr.msra.gmra.mxu1 %vm71_vm0, %v210_v61  ;;  %837 = vmatprep.subr.msk.mxu1 %vm71_vm0, %v345_v63 }
 0x17b   :  { %834 = vmatprep.mubr.msk.f32.mxu1 %vm71_vm0, %v211_v62  ;;  %838 = vmatpush3.xpose.msk.msra.mxu1 %vm71_vm0, %v345_v63 }
 0x17c   :  { %839 = vmatprep.subr.msk.mxu1 %vm71_vm0, %v343_v0 }
 0x17d   :  { %v341_v3 = vpop.permute.xlu0 %340 }
 0x17e   :  { %835 = vmatmul.mubr.msk.f32.gmra.mxu1 %vm71_vm0, %v212_v1 }
 0x17f   :  { %840 = vmatpush3.xpose.msk.msra.mxu1 %vm71_vm0, %v343_v0  ;;  %845 = vmatprep.mubr.msk.f32.mxu1 %vm71_vm0, %v213_v2 }
 0x180   :  { %841 = vmatprep.subr.msk.mxu1 %vm71_vm0, %v341_v3 }
 0x183   :  { %842 = vmatpush3.xpose.msk.msra.mxu1 %vm71_vm0, %v341_v3 }
 0x184   :  { %843 = vmatprep.subr.msk.mxu1 %vm71_vm0, %v339_v4 }
 0x187   :  { %844 = vmatpush3.xpose.msk.msra.mxu1 %vm71_vm0, %v339_v4 }
 0x188   :  { %865 = vmatprep.subr.mxu1 %v205_v52 }
 0x18a   :  { %846 = vmatmul.mubr.msk.f32.vlgmr.msra.gmra.mxu1 %vm71_vm0, %v214_v5 }
 0x18b   :  { %848 = vmatprep.mubr.msk.f32.mxu1 %vm71_vm0, %v215_v6  ;;  %866 = vmatpush3.msra.mxu1 %v205_v52 }
 0x18c   :  { %867 = vmatprep.subr.mxu1 %v199_v48 }
 0x18d   :  { %868 = vmatpush3.msra.mxu1 %v199_v48 }
 0x18e   :  { %849 = vmatmul.mubr.msk.f32.gmra.mxu1 %vm71_vm0, %v216_v7  ;;  %869 = vmatprep.subr.mxu1 %v193_v45 }
 0x18f   :  { %870 = vmatpush3.msra.mxu1 %v193_v45 }
 0x190   :  { %871 = vmatprep.subr.mxu1 %v1038_v40 }
 0x191   :  { %872 = vmatpush3.msra.mxu1 %v1038_v40 }
 0x23a   :  { %v833_v8 = vpop.f32.mrf.mxu1 }
 0x23b   :  { %v454_v9 = vsel %vm71_vm0, %v833_v8, -inf }
 0x23c   :  { %455 = vmax.xlane.f32.xlu0 %v454_v9  ;;  %v315_v10 = vpop.f32.mrf.mxu1 }
 0x23d   :  { %v451_v11 = vsel %vm71_vm0, %v315_v10, -inf }
 0x23e   :  { %v836_v12 = vpop.f32.mrf.mxu1 }
 0x23f   :  { %v460_v22 = vsel %vm71_vm0, %v836_v12, -inf }
 0x240   :  { %452 = vmax.xlane.f32.xlu0 %v451_v11  ;;  %v325_v13 = vpop.f32.mrf.mxu1 }
 0x241   :  { %v457_v20 = vsel %vm71_vm0, %v325_v13, -inf }
 0x24a   :  { %v847_v14 = vpop.f32.mrf.mxu1 }
 0x24b   :  { %v466_v15 = vsel %vm71_vm0, %v847_v14, -inf }
 0x24c   :  { %467 = vmax.xlane.f32.xlu0 %v466_v15  ;;  %v432_v16 = vpop.f32.mrf.mxu1 }
 0x24d   :  { %v463_v17 = vsel %vm71_vm0, %v432_v16, -inf }
 0x24e   :  { %464 = vmax.xlane.f32.xlu1 %v463_v17  ;;  %v850_v18 = vpop.f32.mrf.mxu1 }
 0x24f   :  { %v472_v23 = vsel %vm71_vm0, %v850_v18, -inf }
 0x250   :  { %v442_v19 = vpop.f32.mrf.mxu1 }
 0x251   :  { %v469_v21 = vsel %vm71_vm0, %v442_v19, -inf }
 0x252   :  { %458 = vmax.xlane.f32.xlu1 %v457_v20  ;;  %470 = vmax.xlane.f32.xlu0 %v469_v21 }
 0x256   :  { %461 = vmax.xlane.f32.xlu1 %v460_v22  ;;  %473 = vmax.xlane.f32.xlu0 %v472_v23 }
 0x2c5   :  { %v456_v24 = vpop.xlane.xlu0 %455 }
 0x2c6   :  { %v476_v25 = vsub.f32 %v833_v8, %v456_v24 }
 0x2c8   :  { %v485_v26 = vmul.f32 1.442695, %v476_v25 }
 0x2c9   :  { %v453_v27 = vpop.xlane.xlu0 %452 }
 0x2ca   :  { %888 = vpow2.f32 %v485_v26  ;;  %v475_v28 = vsub.f32 %v315_v10, %v453_v27 }
 0x2cc   :  { %v483_v29 = vmul.f32 1.442695, %v475_v28 }
 0x2ce   :  { %890 = vpow2.f32 %v483_v29 }
 0x2d5   :  { %v468_v30 = vpop.xlane.xlu0 %467 }
 0x2d6   :  { %v480_v31 = vsub.f32 %v847_v14, %v468_v30 }
 0x2d7   :  { %v889_v32 = vpop.eup %888  ;;  %v465_v33 = vpop.xlane.xlu1 %464 }
 0x2d8   :  { %v493_v34 = vmul.f32 1.442695, %v480_v31  ;;  %v479_v35 = vsub.f32 %v432_v16, %v465_v33  ;;  %v502_v36 = vsel %vm71_vm0, %v889_v32, 0.0 }
 0x2d9   :  { %503 = vadd.xlane.f32.xlu1 %v502_v36 }
 0x2da   :  { %892 = vpow2.f32 %v493_v34  ;;  %v491_v37 = vmul.f32 1.442695, %v479_v35 }
 0x2db   :  { %v891_v38 = vpop.eup %890  ;;  %v459_v39 = vpop.xlane.xlu1 %458 }
 0x2dc   :  { %v471_v40 = vpop.xlane.xlu0 %470  ;;  %894 = vpow2.f32 %v491_v37  ;;  %v477_v41 = vsub.f32 %v325_v13, %v459_v39  ;;  %v499_v43 = vsel %vm71_vm0, %v891_v38, 0.0 }
 0x2dd   :  { %v481_v42 = vsub.f32 %v442_v19, %v471_v40  ;;  %500 = vadd.xlane.f32.xlu1 %v499_v43 }
 0x2de   :  { %v487_v44 = vmul.f32 1.442695, %v477_v41 }
 0x2df   :  { %v495_v45 = vmul.f32 1.442695, %v481_v42  ;;  %v462_v46 = vpop.xlane.xlu1 %461 }
 0x2e0   :  { %v474_v47 = vpop.xlane.xlu0 %473  ;;  %896 = vpow2.f32 %v487_v44  ;;  %v478_v48 = vsub.f32 %v836_v12, %v462_v46 }
 0x2e1   :  { %v482_v49 = vsub.f32 %v850_v18, %v474_v47  ;;  %898 = vpow2.f32 %v495_v45 }
 0x2e2   :  { %v489_v50 = vmul.f32 1.442695, %v478_v48 }
 0x2e3   :  { %v497_v51 = vmul.f32 1.442695, %v482_v49 }
 0x2e4   :  { %900 = vpow2.f32 %v489_v50 }
 0x2e5   :  { %902 = vpow2.f32 %v497_v51 }
 0x2e7   :  { %v893_v52 = vpop.eup %892 }
 0x2e8   :  { %v514_v53 = vsel %vm71_vm0, %v893_v52, 0.0 }
 0x2e9   :  { %v895_v54 = vpop.eup %894  ;;  %515 = vadd.xlane.f32.xlu0 %v514_v53 }
 0x2ea   :  { %v511_v55 = vsel %vm71_vm0, %v895_v54, 0.0 }
 0x2ed   :  { %v897_v56 = vpop.eup %896  ;;  %512 = vadd.xlane.f32.xlu0 %v511_v55 }
 0x2ee   :  { %v899_v57 = vpop.eup %898  ;;  %v505_v58 = vsel %vm71_vm0, %v897_v56, 0.0 }
 0x2ef   :  { %506 = vadd.xlane.f32.xlu1 %v505_v58  ;;  %v517_v59 = vsel %vm71_vm0, %v899_v57, 0.0 }
 0x2f1   :  { %v901_v60 = vpop.eup %900  ;;  %518 = vadd.xlane.f32.xlu0 %v517_v59 }
 0x2f2   :  { %v903_v61 = vpop.eup %902  ;;  %v508_v62 = vsel %vm71_vm0, %v901_v60, 0.0 }
 0x2f3   :  { %509 = vadd.xlane.f32.xlu1 %v508_v62  ;;  %v520_v63 = vsel %vm71_vm0, %v903_v61, 0.0 }
 0x2f5   :  { %521 = vadd.xlane.f32.xlu0 %v520_v63 }
 0x362   :  { %v504_v0 = vpop.xlane.xlu1 %503 }
 0x363   :  { %904 = vrcp.f32 %v504_v0 }
 0x366   :  { %v501_v1 = vpop.xlane.xlu1 %500 }
 0x367   :  { %906 = vrcp.f32 %v501_v1 }
 0x370   :  { %v905_v3 = vpop.eup %904 }
 0x371   :  { %v532_v6 = vmul.f32 %v905_v3, %v889_v32 }
 0x372   :  { %v516_v2 = vpop.xlane.xlu0 %515 }
 0x373   :  { %908 = vrcp.f32 %v516_v2 }
 0x374   :  { %v907_v4 = vpop.eup %906 }
 0x375   :  { %v531_v5 = vmul.f32 %v907_v4, %v891_v38 }
 0x376   :  { %v513_v7 = vpop.xlane.xlu0 %512 }
 0x377   :  { %910 = vrcp.f32 %v513_v7  ;;  %859 = vmatprep.mubr.msk.f32.mxu0 %vm71_vm0, %v531_v5 }
 0x378   :  { %v507_v8 = vpop.xlane.xlu1 %506  ;;  %860 = vmatmul.mubr.msk.f32.vlgmr.msra.gmra.mxu0 %vm71_vm0, %v532_v6 }
 0x379   :  { %912 = vrcp.f32 %v507_v8 }
 0x37a   :  { %v519_v9 = vpop.xlane.xlu0 %518 }
 0x37b   :  { %914 = vrcp.f32 %v519_v9 }
 0x37c   :  { %v510_v10 = vpop.xlane.xlu1 %509 }
 0x37d   :  { %916 = vrcp.f32 %v510_v10 }
 0x37e   :  { %v522_v11 = vpop.xlane.xlu0 %521 }
 0x37f   :  { %918 = vrcp.f32 %v522_v11 }
 0x380   :  { %v909_v12 = vpop.eup %908 }
 0x381   :  { %v536_v16 = vmul.f32 %v909_v12, %v893_v52 }
 0x384   :  { %v911_v13 = vpop.eup %910 }
 0x385   :  { %v535_v14 = vmul.f32 %v911_v13, %v895_v54 }
 0x386   :  { %v913_v15 = vpop.eup %912 }
 0x387   :  { %873 = vmatprep.mubr.msk.f32.mxu1 %vm71_vm0, %v535_v14  ;;  %v533_v17 = vmul.f32 %v913_v15, %v897_v56 }
 0x388   :  { %v915_v18 = vpop.eup %914  ;;  %874 = vmatmul.mubr.msk.f32.vlgmr.msra.gmra.mxu1 %vm71_vm0, %v536_v16 }
 0x389   :  { %862 = vmatprep.mubr.msk.f32.mxu0 %vm71_vm0, %v533_v17  ;;  %v537_v19 = vmul.f32 %v915_v18, %v899_v57 }
 0x38a   :  { %v917_v20 = vpop.eup %916 }
 0x38b   :  { %876 = vmatprep.mubr.msk.f32.mxu1 %vm71_vm0, %v537_v19  ;;  %v534_v21 = vmul.f32 %v917_v20, %v901_v60 }
 0x38c   :  { %v919_v22 = vpop.eup %918 }
 0x38d   :  { %863 = vmatmul.mubr.msk.f32.gmra.mxu0 %vm71_vm0, %v534_v21  ;;  %v538_v23 = vmul.f32 %v919_v22, %v903_v61 }
 0x38f   :  { %877 = vmatmul.mubr.msk.f32.gmra.mxu1 %vm71_vm0, %v538_v23 }
 0x438   :  { %v861_v24 = vpop.f32.mrf.mxu0 }
 0x439   :  { %734 = vst [vmem:[#allocation7 + $0x8] sm:$0xff] %v861_v24 }
 0x43a   :  { %v617_v25 = vpop.f32.mrf.mxu0 }
 0x43b   :  { %733 = vst [vmem:[#allocation7] sm:$0xff] %v617_v25 }
 0x448   :  { %v875_v26 = vpop.f32.mrf.mxu1 }
 0x449   :  { %738 = vst [vmem:[#allocation7 + $0x28] sm:$0xff] %v875_v26 }
 0x44a   :  { %v714_v27 = vpop.f32.mrf.mxu1 }
 0x44b   :  { %737 = vst [vmem:[#allocation7 + $0x20] sm:$0xff] %v714_v27 }
 0x44d   :  { %v864_v28 = vpop.f32.mrf.mxu0 }
 0x44e   :  { %736 = vst [vmem:[#allocation7 + $0x18] sm:$0xff] %v864_v28 }
 0x44f   :  { %v627_v29 = vpop.f32.mrf.mxu0  ;;  %v878_v30 = vpop.f32.mrf.mxu1 }
 0x450   :  { %735 = vst [vmem:[#allocation7 + $0x10] sm:$0xff] %v627_v29  ;;  %740 = vst [vmem:[#allocation7 + $0x38] sm:$0xff] %v878_v30 }
 0x451   :  { %v724_v31 = vpop.f32.mrf.mxu1 }
 0x452   :  { %739 = vst [vmem:[#allocation7 + $0x30] sm:$0xff] %v724_v31 }
 0x453   :  { %971 = shalt.err (!%p968_p0)
}
 0x454   :  { %752 = dma.vmem_to_hbm [thread:$0]  %s747_s27, 1024, %s1104_s3, [#allocation4], %s987_s15, %s987_s15, %s988_s16  }
 0x455   :  { %984 = dma.done.wait [#allocation4], 1024  }
 0x456   :  { %985 = vsyncadd [#allocation4], 4294966272 }
 0x457   :  { %756 = vsyncpa [#allocation3], 1 }
 0x458   :  { %757 = vsyncpa [#allocation6], 1 }
 0x459   :  { %758 = vsyncpa [#allocation4], 1 }

</bundles_post_ra>
